<compile_context>
chip_gen: v7x
topology: tpu7x:2x2x1
jax: 0.10.0
libtpu: 0.0.40
codegen_flags: <defaults>
</compile_context>

<pallas_src>
import math

import jax
import jax.numpy as jnp
from jax.experimental import pallas as pl
from jax.experimental.pallas import tpu as pltpu


def _round_up(x, m):
    return ((x + m - 1) // m) * m


def _pad2d(a, rows, cols):
    return jnp.pad(a, ((0, rows - a.shape[0]), (0, cols - a.shape[1])))


# ---------------------------------------------------------------------------
# Kernel: one fused pass over a packed batch tile.
#   x_ref   : (tile_rows, L_in)  f32   -- PACK batch rows per 128-lane row
#   w1_ref  : (L_in, L_h)        f32   -- block-diag fc1 (kept f32 for accuracy)
#   w23_ref : (L_h, L_h)         bf16  -- block-diag folded fc2 @ fc3
#   w4_ref  : (L_h, L_in)        bf16  -- block-diag fc4
#   b*_ref  : (1, L)             f32   -- biases, tiled per block
#   out_ref : (tile_rows, L_in)  bf16 (default) -- packed reconstruction
# ---------------------------------------------------------------------------
def _ae_kernel(x_ref, w1_ref, b1_ref, w23_ref, b23_ref, w4_ref, b4_ref, out_ref):
    x = x_ref[...]                                     # f32; no wrapper-side cast
    # encode: h1 = tanh(fc1(x))  -- f32 matmul (MXU has plenty of slack here)
    h1 = jnp.tanh(
        jnp.dot(x, w1_ref[...], preferred_element_type=jnp.float32) + b1_ref[...])
    # fc2 and fc3 folded into a single matmul (no nonlinearity between them)
    h3 = jnp.tanh(
        jnp.dot(h1.astype(jnp.bfloat16), w23_ref[...],
                preferred_element_type=jnp.float32) + b23_ref[...])
    # decode tail: recon = fc4(h3)
    rec = jnp.dot(h3.astype(jnp.bfloat16), w4_ref[...],
                  preferred_element_type=jnp.float32) + b4_ref[...]
    out_ref[...] = rec.astype(out_ref.dtype)


# ---------------------------------------------------------------------------
# One-time parameter preparation: fold fc2@fc3, build block-diagonal weights,
# tile biases.  All done in f32, then (where applicable) cast to bf16.
# ---------------------------------------------------------------------------
def prepare_params(params, in_dim, h_dim, z_dim):
    pack = 128 // in_dim if (in_dim <= 128 and 128 % in_dim == 0) else 1
    L_in = pack * in_dim if pack > 1 else _round_up(in_dim, 128)
    L_h = _round_up(pack * h_dim, 128)

    w1, b1, w2, b2, w3, b3, w4, b4 = [jnp.asarray(p, jnp.float32) for p in params]
    w23 = w2 @ w3                           # (h, h)   folded fc2 @ fc3
    b23 = b2 @ w3 + b3                      # (1, h)
    eye = jnp.eye(pack, dtype=jnp.float32)

    def bd(w, rows, cols):                  # PACK-way block-diagonal + zero pad
        return _pad2d(jnp.kron(eye, w), rows, cols)

    def bt(b, cols):                        # bias tiled per block + zero pad
        return _pad2d(jnp.tile(b, (1, pack)), 1, cols)

    packed = (
        bd(w1, L_in, L_h),                            # f32 (fc1 kept f32)
        bt(b1, L_h),
        bd(w23, L_h, L_h).astype(jnp.bfloat16),
        bt(b23, L_h),
        bd(w4, L_h, L_in).astype(jnp.bfloat16),
        bt(b4, L_in),
    )
    return packed, (pack, L_in, L_h)


# ---------------------------------------------------------------------------
# Wrapper
# ---------------------------------------------------------------------------
def ae_forward(x, packed_params, dims, *, block_b=2048, out_dtype=jnp.bfloat16):
    """x: (B, S, F) float32.  Returns recon with x's shape (dtype `out_dtype`)."""
    pack, L_in, L_h = dims
    B, S, F = x.shape
    D = S * F

    # Batch tile: large (amortizes per-grid-step overhead), quantized so the
    # packed tile keeps >=16 sublanes; if everything would fit in one grid step
    # and the tile can be split, halve it so v7x's two TensorCores both work.
    row_quant = 16 * pack
    tm = min(_round_up(block_b, row_quant), _round_up(B, row_quant))
    b_pad = _round_up(B, tm)
    if b_pad == tm and tm >= 2 * row_quant:
        tm = _round_up(tm // 2, row_quant)
        b_pad = _round_up(B, tm)
    n_steps = b_pad // tm
    rows = b_pad // pack
    tile_rows = tm // pack

    # Lane-dense packed input: no dtype cast, no 128-lane zero pad in HBM.
    x_rows = x.reshape(B, D)
    if b_pad != B:
        x_rows = jnp.pad(x_rows, ((0, b_pad - B), (0, 0)))
    if pack > 1:
        x_in = x_rows.reshape(rows, L_in)          # contiguous => free reshape
    else:
        x_in = _pad2d(x_rows, b_pad, L_in)         # fallback when 128 % D != 0

    out_isz = jnp.dtype(out_dtype).itemsize
    cost = pl.CostEstimate(
        flops=2 * rows * L_h * (2 * L_in + L_h),
        transcendentals=2 * rows * L_h,
        bytes_accessed=(rows * L_in * 4 + rows * L_in * out_isz
                        + L_in * L_h * 4 + (L_h * L_h + L_h * L_in) * 2
                        + (2 * L_h + L_in) * 4),
    )

    const = lambda i: (0, 0)   # weights/biases VMEM-resident across grid steps
    recon_packed = pl.pallas_call(
        _ae_kernel,
        out_shape=jax.ShapeDtypeStruct((rows, L_in), out_dtype),
        grid=(n_steps,),
        in_specs=[
            pl.BlockSpec((tile_rows, L_in), lambda i: (i, 0)),   # packed x (streamed)
            pl.BlockSpec((L_in, L_h), const), pl.BlockSpec((1, L_h), const),   # fc1
            pl.BlockSpec((L_h, L_h), const), pl.BlockSpec((1, L_h), const),    # fc2@fc3
            pl.BlockSpec((L_h, L_in), const), pl.BlockSpec((1, L_in), const),  # fc4
        ],
        out_specs=pl.BlockSpec((tile_rows, L_in), lambda i: (i, 0)),
        compiler_params=pltpu.CompilerParams(dimension_semantics=("parallel",)),
        cost_estimate=cost,
    )(x_in, *packed_params)

    if pack > 1:
        rec = recon_packed.reshape(b_pad, D)       # contiguous => free reshape
    else:
        rec = recon_packed[:, :D]
    return rec[:B].reshape(x.shape)


# ---------------------------------------------------------------------------
# Parameter init matching the PyTorch module: xavier_normal(gain=sqrt(2)) on
# weights, default nn.Linear uniform bias.  Stored as (in, out) so the kernel
# computes x @ W == PyTorch x @ W.T.
# ---------------------------------------------------------------------------
def _xavier_normal_t(key, fan_in, fan_out, gain):
    std = gain * math.sqrt(2.0 / (fan_in + fan_out))
    return std * jax.random.normal(key, (fan_in, fan_out), jnp.float32)


def _linear_bias(key, fan_in, fan_out):
    bound = 1.0 / math.sqrt(fan_in)
    return jax.random.uniform(key, (1, fan_out), jnp.float32, -bound, bound)


def init_ae_params(key, in_dim, h_dim, z_dim):
    gain = math.sqrt(2.0)
    ks = jax.random.split(key, 8)
    w1 = _xavier_normal_t(ks[0], in_dim, h_dim, gain)
    b1 = _linear_bias(ks[1], in_dim, h_dim)
    w2 = _xavier_normal_t(ks[2], h_dim, z_dim, gain)
    b2 = _linear_bias(ks[3], h_dim, z_dim)
    w3 = _xavier_normal_t(ks[4], z_dim, h_dim, gain)
    b3 = _linear_bias(ks[5], z_dim, h_dim)
    w4 = _xavier_normal_t(ks[6], h_dim, in_dim, gain)
    b4 = _linear_bias(ks[7], h_dim, in_dim)
    return (w1, b1, w2, b2, w3, b3, w4, b4)


if __name__ == "__main__":
    # shape = (batch, sequence_length, feature); AE(shape, h_dim, z_dim)
    B, S, F = 2, 8, 4
    h_dim, z_dim = 32, 16
    D = S * F

    key = jax.random.PRNGKey(0)
    k_x, k_p = jax.random.split(key)
    x = jax.random.normal(k_x, (B, S, F), jnp.float32)

    params = init_ae_params(k_p, D, h_dim, z_dim)
    packed_params, dims = prepare_params(params, D, h_dim, z_dim)

    recon = ae_forward(x, packed_params, dims)
    jax.block_until_ready(recon)
    assert recon.shape == x.shape
    rec_f32 = recon.astype(jnp.float32)

    # Reference 1: same math / same casts as the kernel (fc1 in f32, folded
    # fc2@fc3 and fc4 with bf16 operands) -- checks wiring & packing.
    w1, b1, w2, b2, w3, b3, w4, b4 = params
    xf = x.reshape(B, D)
    w23 = w2 @ w3
    b23 = b2 @ w3 + b3

    def dot_bf16(a, w):
        return jnp.dot(a.astype(jnp.bfloat16), w.astype(jnp.bfloat16),
                       preferred_element_type=jnp.float32)

    h1 = jnp.tanh(xf @ w1 + b1)
    h3 = jnp.tanh(dot_bf16(h1, w23) + b23)
    rec_kernel_ref = (dot_bf16(h3, w4) + b4).reshape(x.shape)
    err1 = float(jnp.max(jnp.abs(rec_f32 - rec_kernel_ref)))
    assert err1 < 5e-2, err1

    # Reference 2: pure f32, unfused semantics of the original AE (loose check
    # on bf16 quantization + fc2/fc3 fold drift).
    h1f = jnp.tanh(xf @ w1 + b1)
    zf = h1f @ w2 + b2
    h3f = jnp.tanh(zf @ w3 + b3)
    rec_ref = (h3f @ w4 + b4).reshape(x.shape)
    err2 = float(jnp.max(jnp.abs(rec_f32 - rec_ref)))
    assert err2 < 2e-1, err2

    print("KERNEL_OK")
</pallas_src>

<mosaic_0001>
module attributes {stable_mosaic.version = 11 : i64} {
  func.func @_ae_kernel(%arg0: i32, %arg1: memref<16x128xf32, #tpu.memory_space<vmem>>, %arg2: memref<128x128xf32, #tpu.memory_space<vmem>>, %arg3: memref<1x128xf32, #tpu.memory_space<vmem>>, %arg4: memref<128x128xbf16, #tpu.memory_space<vmem>>, %arg5: memref<1x128xf32, #tpu.memory_space<vmem>>, %arg6: memref<128x128xbf16, #tpu.memory_space<vmem>>, %arg7: memref<1x128xf32, #tpu.memory_space<vmem>>, %arg8: memref<16x128xbf16, #tpu.memory_space<vmem>>) attributes {dimension_semantics = [#tpu.dimension_semantics<parallel>], iteration_bounds = array<i64: 1>, scalar_prefetch = 0 : i64, scratch_operands = 0 : i64, tpu.core_type = #tpu.core_type<tc>, window_params = [{transform_indices = @transform_0, window_bounds = array<i64: 16, 128>}, {pipeline_mode = #tpu.pipeline_mode<synchronous>, transform_indices = @transform_1, window_bounds = array<i64: 128, 128>}, {pipeline_mode = #tpu.pipeline_mode<synchronous>, transform_indices = @transform_2, window_bounds = array<i64: 1, 128>}, {pipeline_mode = #tpu.pipeline_mode<synchronous>, transform_indices = @transform_3, window_bounds = array<i64: 128, 128>}, {pipeline_mode = #tpu.pipeline_mode<synchronous>, transform_indices = @transform_4, window_bounds = array<i64: 1, 128>}, {pipeline_mode = #tpu.pipeline_mode<synchronous>, transform_indices = @transform_5, window_bounds = array<i64: 128, 128>}, {pipeline_mode = #tpu.pipeline_mode<synchronous>, transform_indices = @transform_6, window_bounds = array<i64: 1, 128>}, {transform_indices = @transform_7, window_bounds = array<i64: 16, 128>}]} {
    %c0 = arith.constant 0 : index
    %c0_0 = arith.constant 0 : index
    %0 = vector.load %arg1[%c0, %c0_0] : memref<16x128xf32, #tpu.memory_space<vmem>>, vector<16x128xf32>
    %c0_1 = arith.constant 0 : index
    %c0_2 = arith.constant 0 : index
    %1 = vector.load %arg2[%c0_1, %c0_2] : memref<128x128xf32, #tpu.memory_space<vmem>>, vector<128x128xf32>
    %cst = arith.constant dense<0.000000e+00> : vector<16x128xf32>
    %2 = tpu.matmul %0, %1, %cst {dimension_numbers = #tpu.dot_dimension_numbers<[1], [0], [0], [1], [0, 0, 1, 1], [], []>} : vector<16x128xf32>, vector<128x128xf32>, vector<16x128xf32> -> vector<16x128xf32>
    %c0_3 = arith.constant 0 : index
    %c0_4 = arith.constant 0 : index
    %3 = vector.load %arg3[%c0_3, %c0_4] : memref<1x128xf32, #tpu.memory_space<vmem>>, vector<1x128xf32>
    %4 = vector.broadcast %3 : vector<1x128xf32> to vector<16x128xf32>
    %5 = arith.addf %2, %4 : vector<16x128xf32>
    %6 = math.tanh %5 : vector<16x128xf32>
    %7 = arith.truncf %6 : vector<16x128xf32> to vector<16x128xbf16>
    %c0_5 = arith.constant 0 : index
    %c0_6 = arith.constant 0 : index
    %8 = vector.load %arg4[%c0_5, %c0_6] : memref<128x128xbf16, #tpu.memory_space<vmem>>, vector<128x128xbf16>
    %cst_7 = arith.constant dense<0.000000e+00> : vector<16x128xf32>
    %9 = tpu.matmul %7, %8, %cst_7 {dimension_numbers = #tpu.dot_dimension_numbers<[1], [0], [0], [1], [0, 0, 1, 1], [], []>} : vector<16x128xbf16>, vector<128x128xbf16>, vector<16x128xf32> -> vector<16x128xf32>
    %c0_8 = arith.constant 0 : index
    %c0_9 = arith.constant 0 : index
    %10 = vector.load %arg5[%c0_8, %c0_9] : memref<1x128xf32, #tpu.memory_space<vmem>>, vector<1x128xf32>
    %11 = vector.broadcast %10 : vector<1x128xf32> to vector<16x128xf32>
    %12 = arith.addf %9, %11 : vector<16x128xf32>
    %13 = math.tanh %12 : vector<16x128xf32>
    %14 = arith.truncf %13 : vector<16x128xf32> to vector<16x128xbf16>
    %c0_10 = arith.constant 0 : index
    %c0_11 = arith.constant 0 : index
    %15 = vector.load %arg6[%c0_10, %c0_11] : memref<128x128xbf16, #tpu.memory_space<vmem>>, vector<128x128xbf16>
    %cst_12 = arith.constant dense<0.000000e+00> : vector<16x128xf32>
    %16 = tpu.matmul %14, %15, %cst_12 {dimension_numbers = #tpu.dot_dimension_numbers<[1], [0], [0], [1], [0, 0, 1, 1], [], []>} : vector<16x128xbf16>, vector<128x128xbf16>, vector<16x128xf32> -> vector<16x128xf32>
    %c0_13 = arith.constant 0 : index
    %c0_14 = arith.constant 0 : index
    %17 = vector.load %arg7[%c0_13, %c0_14] : memref<1x128xf32, #tpu.memory_space<vmem>>, vector<1x128xf32>
    %18 = vector.broadcast %17 : vector<1x128xf32> to vector<16x128xf32>
    %19 = arith.addf %16, %18 : vector<16x128xf32>
    %20 = arith.truncf %19 : vector<16x128xf32> to vector<16x128xbf16>
    %c0_15 = arith.constant 0 : index
    %c0_16 = arith.constant 0 : index
    %21 = vector.load %arg8[%c0_15, %c0_16] : memref<16x128xbf16, #tpu.memory_space<vmem>>, vector<16x128xbf16>
    tpu.vector_store %arg8[%c0_15, %c0_16], %20 {strides = array<i32>} : memref<16x128xbf16, #tpu.memory_space<vmem>>, vector<16x128xbf16>,
    return
  }
  func.func @transform_0(%arg0: i32) -> (i32, i32) {
    %c0_i32 = arith.constant 0 : i32
    %c0_i32_0 = arith.constant 0 : i32
    return %arg0, %c0_i32 : i32, i32
  }
  func.func @transform_1(%arg0: i32) -> (i32, i32) {
    %c0_i32 = arith.constant 0 : i32
    %c0_i32_0 = arith.constant 0 : i32
    %c0_i32_1 = arith.constant 0 : i32
    return %c0_i32, %c0_i32_0 : i32, i32
  }
  func.func @transform_2(%arg0: i32) -> (i32, i32) {
    %c0_i32 = arith.constant 0 : i32
    %c0_i32_0 = arith.constant 0 : i32
    %c0_i32_1 = arith.constant 0 : i32
    return %c0_i32, %c0_i32_0 : i32, i32
  }
  func.func @transform_3(%arg0: i32) -> (i32, i32) {
    %c0_i32 = arith.constant 0 : i32
    %c0_i32_0 = arith.constant 0 : i32
    %c0_i32_1 = arith.constant 0 : i32
    return %c0_i32, %c0_i32_0 : i32, i32
  }
  func.func @transform_4(%arg0: i32) -> (i32, i32) {
    %c0_i32 = arith.constant 0 : i32
    %c0_i32_0 = arith.constant 0 : i32
    %c0_i32_1 = arith.constant 0 : i32
    return %c0_i32, %c0_i32_0 : i32, i32
  }
  func.func @transform_5(%arg0: i32) -> (i32, i32) {
    %c0_i32 = arith.constant 0 : i32
    %c0_i32_0 = arith.constant 0 : i32
    %c0_i32_1 = arith.constant 0 : i32
    return %c0_i32, %c0_i32_0 : i32, i32
  }
  func.func @transform_6(%arg0: i32) -> (i32, i32) {
    %c0_i32 = arith.constant 0 : i32
    %c0_i32_0 = arith.constant 0 : i32
    %c0_i32_1 = arith.constant 0 : i32
    return %c0_i32, %c0_i32_0 : i32, i32
  }
  func.func @transform_7(%arg0: i32) -> (i32, i32) {
    %c0_i32 = arith.constant 0 : i32
    %c0_i32_0 = arith.constant 0 : i32
    return %arg0, %c0_i32 : i32, i32
  }
}

</mosaic_0001>

<bundles_post_ra>
// kernel: tpu_custom_call.1
= control target key start
LH: loop header
LB: loop body
LE: loop exit
PB: predicated region body
PF: predicated region fallthrough
CT: control target
= control target key end

     0   :  { %12 = vsyncpa [#allocation3], 0  ;;  %s920_s0 = inlined_call_operand.hbm [shape: f32[16,128], index: 0, kind: input, shape index: {}]   ;;  %s921_s1 = inlined_call_operand.hbm [shape: f32[128,128], index: 1, kind: input, shape index: {}]   ;;  %s922_s2 = inlined_call_operand.vmem [shape: f32[1,128], index: 2, kind: input, shape index: {}]   ;;  %s923_s3 = inlined_call_operand.hbm [shape: bf16[128,128], index: 3, kind: input, shape index: {}]   ;;  %s924_s4 = inlined_call_operand.vmem [shape: f32[1,128], index: 4, kind: input, shape index: {}]   ;;  %s925_s5 = inlined_call_operand.hbm [shape: bf16[128,128], index: 5, kind: input, shape index: {}]   ;;  %s926_s6 = inlined_call_operand.vmem [shape: f32[1,128], index: 6, kind: input, shape index: {}]   ;;  %s927_s7 = inlined_call_operand.hbm [shape: bf16[16,128], index: 7, kind: output, shape index: {}]  }
   0x1   :  { %13 = vsyncpa [#allocation6], 0 }
   0x2   :  { %14 = vsyncpa [#allocation9], 0 }
   0x3   :  { %15 = vsyncpa [#allocation4], 0  ;;  %s766_s24 = smov [#allocation5]   ;;  %s767_s26 = smov [#allocation2]  }
   0x4   :  { %s33_s25 = sshll.u32 %s766_s24, 4  ;;  %s21_s27 = sshll.u32 %s767_s26, 4  ;;  %s34_s25 = int_to_ptr.vmem [resolvable:$true] %s33_s25  ;;  %s817_s27 = int_to_ptr.vmem [resolvable:$true] %s21_s27 }
   0x5   :  { %s648_s30 = scalar_lea.hbm %s921_s1, 2048 }
   0x6   :  { %p649_p0 = scmp.ne.s32.totalorder %s921_s1, %s648_s30  ;;  %p652_p1 = scmp.lt.u32.totalorder %s648_s30, %s921_s1 }
   0x8   :  { %p654_p2 = pnand %p652_p1, %p649_p0 }
   0xa   :  { %657 = shalt.err (!%p654_p2)
}
   0xb   :  { %s658_s12 = scalar_lea.vmem %s34_s25, 2048  ;;  %p663_p4 = scmp.lt.s32.totalorder %s34_s25, %s34_s25 }
   0xc   :  { %p659_p3 = scmp.ne.s32.totalorder %s34_s25, %s658_s12  ;;  %p664_p5 = scmp.lt.s32.totalorder %s658_s12, %s658_s12 }
   0xe   :  { %p665_p6 = por %p664_p5, %p663_p4 }
  0x10   :  { %p666_p7 = pnand %p665_p6, %p659_p3 }
  0x12   :  { %669 = shalt.err (!%p666_p7)
}
  0x13   :  { %s768_s13 = smov 128   ;;  %s769_s14 = smov 8  }
  0x14   :  { %39 = dma.hbm_to_vmem [thread:$0]  %s921_s1, 2048, %s34_s25, [#allocation6], %s768_s13, %s768_s13, %s769_s14  }
  0x15   :  { %s670_s19 = scalar_lea.hbm %s920_s0, 256 }
  0x16   :  { %p671_p8 = scmp.ne.s32.totalorder %s920_s0, %s670_s19  ;;  %p674_p9 = scmp.lt.u32.totalorder %s670_s19, %s920_s0 }
  0x18   :  { %p676_p10 = pnand %p674_p9, %p671_p8 }
  0x1a   :  { %679 = shalt.err (!%p676_p10)
}
  0x1b   :  { %s680_s24 = scalar_lea.vmem %s817_s27, 256  ;;  %p685_p12 = scmp.lt.s32.totalorder %s817_s27, %s817_s27 }
  0x1c   :  { %p681_p11 = scmp.ne.s32.totalorder %s817_s27, %s680_s24  ;;  %p686_p13 = scmp.lt.s32.totalorder %s680_s24, %s680_s24 }
  0x1e   :  { %p687_p0 = por %p686_p13, %p685_p12 }
  0x20   :  { %p688_p1 = pnand %p687_p0, %p681_p11 }
  0x22   :  { %691 = shalt.err (!%p688_p1)
}
  0x23   :  { %27 = dma.hbm_to_vmem [thread:$0]  %s920_s0, 256, %s817_s27, [#allocation3], %s768_s13, %s768_s13, %s769_s14  }
  0x24   :  { %s770_s26 = smov [#allocation7]   ;;  %s692_s8 = scalar_lea.hbm %s923_s3, 1024 }
  0x25   :  { %s47_s28 = sshll.u32 %s770_s26, 4  ;;  %p693_p2 = scmp.ne.s32.totalorder %s923_s3, %s692_s8  ;;  %s48_s28 = int_to_ptr.vmem [resolvable:$true] %s47_s28 }
  0x26   :  { %p696_p3 = scmp.lt.u32.totalorder %s692_s8, %s923_s3 }
  0x28   :  { %p698_p4 = pnand %p696_p3, %p693_p2 }
  0x2a   :  { %701 = shalt.err (!%p698_p4)
}
  0x2b   :  { %s702_s15 = scalar_lea.vmem %s48_s28, 1024  ;;  %p707_p6 = scmp.lt.s32.totalorder %s48_s28, %s48_s28 }
  0x2c   :  { %p703_p5 = scmp.ne.s32.totalorder %s48_s28, %s702_s15  ;;  %p708_p7 = scmp.lt.s32.totalorder %s702_s15, %s702_s15 }
  0x2e   :  { %p709_p8 = por %p708_p7, %p707_p6 }
  0x30   :  { %p710_p9 = pnand %p709_p8, %p703_p5 }
  0x32   :  { %713 = shalt.err (!%p710_p9)
}
  0x33   :  { %s771_s0 = smov 64   ;;  %s772_s27 = smov 4  }
  0x34   :  { %53 = dma.hbm_to_vmem [thread:$0]  %s923_s3, 1024, %s48_s28, [#allocation6], %s771_s0, %s771_s0, %s772_s27  }
  0x35   :  { %s773_s16 = smov [#allocation8]   ;;  %s714_s20 = scalar_lea.hbm %s925_s5, 1024 }
  0x36   :  { %s61_s17 = sshll.u32 %s773_s16, 4  ;;  %p715_p10 = scmp.ne.s32.totalorder %s925_s5, %s714_s20  ;;  %s62_s17 = int_to_ptr.vmem [resolvable:$true] %s61_s17 }
  0x37   :  { %p718_p11 = scmp.lt.u32.totalorder %s714_s20, %s925_s5 }
  0x39   :  { %p720_p12 = pnand %p718_p11, %p715_p10 }
  0x3b   :  { %723 = shalt.err (!%p720_p12)
}
  0x3c   :  { %s724_s1 = scalar_lea.vmem %s62_s17, 1024  ;;  %p729_p0 = scmp.lt.s32.totalorder %s62_s17, %s62_s17 }
  0x3d   :  { %p725_p13 = scmp.ne.s32.totalorder %s62_s17, %s724_s1  ;;  %p730_p1 = scmp.lt.s32.totalorder %s724_s1, %s724_s1 }
  0x3f   :  { %p731_p2 = por %p730_p1, %p729_p0 }
  0x41   :  { %p732_p3 = pnand %p731_p2, %p725_p13 }
  0x43   :  { %735 = shalt.err (!%p732_p3)
}
  0x44   :  { %67 = dma.hbm_to_vmem [thread:$0]  %s925_s5, 1024, %s62_s17, [#allocation9], %s771_s0, %s771_s0, %s772_s27  }
  0x45   :  { %758 = dma.done.wait [#allocation3], 256  }
  0x46   :  { %759 = vsyncadd [#allocation3], 4294967040 }
  0x47   :  { %760 = dma.done.wait [#allocation6], 3072  }
  0x48   :  { %761 = vsyncadd [#allocation6], 4294964224 }
  0x49   :  { %762 = dma.done.wait [#allocation9], 1024  }
  0x4a   :  { %763 = vsyncadd [#allocation9], 4294966272  ;;  %v774_v0 = vmov 0.0   ;;  %v85_v1 = vld [vmem:[#allocation5] sm:$0xff]  ;;  %v86_v2 = vld [vmem:[#allocation5 + $0x8] sm:$0xff]  ;;  %vm775_vm0 = vmmov 0  }
  0x4b   :  { %541 = vmatprep.subr.bf16.mxu1 %v774_v0  ;;  %v87_v3 = vld [vmem:[#allocation5 + $0x10] sm:$0xff]  ;;  %v581_v4 = vpack.c.bf16 %v86_v2, %v85_v1  ;;  %v88_v5 = vld [vmem:[#allocation5 + $0x18] sm:$0xff]  ;;  %v89_v7 = vld [vmem:[#allocation5 + $0x20] sm:$0xff]  ;;  %557 = vmatprep.mubr.msk.bf16.mxu1 %vm775_vm0, %v774_v0 }
  0x4c   :  { %v585_v6 = vpack.c.bf16 %v88_v5, %v87_v3  ;;  %v90_v8 = vld [vmem:[#allocation5 + $0x28] sm:$0xff]  ;;  %v91_v10 = vld [vmem:[#allocation5 + $0x30] sm:$0xff]  ;;  %v92_v11 = vld [vmem:[#allocation5 + $0x38] sm:$0xff] }
  0x4d   :  { %582 = vmatprep.subr.bf16.mxu0 %v581_v4  ;;  %v589_v9 = vpack.c.bf16 %v90_v8, %v89_v7  ;;  %v83_v12 = vld [vmem:[#allocation2] sm:$0xff]  ;;  %v624_v13 = vld [vmem:[#allocation7] sm:$0xff]   ;;  %v625_v15 = vld [vmem:[#allocation7 + $0x8] sm:$0xff]   ;;  %v593_v16 = vpack.c.bf16 %v92_v11, %v91_v10 }
  0x4e   :  { %584 = vmatpush3.bf16.msra.mxu0 %v581_v4  ;;  %538 = vmatprep.mubr.f32.mxu0 %v83_v12  ;;  %v93_v14 = vld [vmem:[#allocation5 + $0x40] sm:$0xff]  ;;  %v94_v17 = vld [vmem:[#allocation5 + $0x48] sm:$0xff]  ;;  %v626_v18 = vld [vmem:[#allocation7 + $0x10] sm:$0xff]  }
  0x4f   :  { %586 = vmatprep.subr.bf16.mxu0 %v585_v6  ;;  %542 = vmatpush3.bf16.msra.mxu1 %v624_v13  ;;  %v95_v19 = vld [vmem:[#allocation5 + $0x50] sm:$0xff]  ;;  %v96_v20 = vld [vmem:[#allocation5 + $0x58] sm:$0xff]  ;;  %v597_v21 = vpack.c.bf16 %v94_v17, %v93_v14  ;;  %v97_v24 = vld [vmem:[#allocation5 + $0x60] sm:$0xff] }
  0x50   :  { %543 = vmatprep.subr.bf16.mxu1 %v774_v0  ;;  %v627_v22 = vld [vmem:[#allocation7 + $0x18] sm:$0xff]   ;;  %v601_v23 = vpack.c.bf16 %v96_v20, %v95_v19  ;;  %v98_v25 = vld [vmem:[#allocation5 + $0x68] sm:$0xff]  ;;  %v99_v27 = vld [vmem:[#allocation5 + $0x70] sm:$0xff] }
  0x51   :  { %v605_v26 = vpack.c.bf16 %v98_v25, %v97_v24  ;;  %v100_v28 = vld [vmem:[#allocation5 + $0x78] sm:$0xff]  ;;  %v628_v31 = vld [vmem:[#allocation7 + $0x20] sm:$0xff]   ;;  %v629_v32 = vld [vmem:[#allocation7 + $0x28] sm:$0xff]  }
  0x52   :  { %588 = vmatpush3.bf16.msra.mxu0 %v585_v6  ;;  %v609_v29 = vpack.c.bf16 %v100_v28, %v99_v27  ;;  %v84_v30 = vld [vmem:[#allocation2 + $0x8] sm:$0xff]  ;;  %v630_v33 = vld [vmem:[#allocation7 + $0x30] sm:$0xff]   ;;  %v632_v35 = vld [vmem:[#allocation8] sm:$0xff]  }
  0x53   :  { %590 = vmatprep.subr.bf16.mxu0 %v589_v9  ;;  %544 = vmatpush3.bf16.msra.mxu1 %v625_v15  ;;  %v631_v34 = vld [vmem:[#allocation7 + $0x38] sm:$0xff]   ;;  %v633_v36 = vld [vmem:[#allocation8 + $0x8] sm:$0xff]   ;;  %v634_v37 = vld [vmem:[#allocation8 + $0x10] sm:$0xff]  }
  0x54   :  { %545 = vmatprep.subr.bf16.mxu1 %v774_v0  ;;  %v635_v38 = vld [vmem:[#allocation8 + $0x18] sm:$0xff]   ;;  %v442_v39 = vld [vmem:[%s922_s2] ss:$0 sm:$0xff]  ;;  %v636_v47 = vld [vmem:[#allocation8 + $0x20] sm:$0xff]  }
  0x55   :  { %v637_v48 = vld [vmem:[#allocation8 + $0x28] sm:$0xff]   ;;  %v638_v49 = vld [vmem:[#allocation8 + $0x30] sm:$0xff]   ;;  %v639_v50 = vld [vmem:[#allocation8 + $0x38] sm:$0xff]  }
  0x56   :  { %592 = vmatpush3.bf16.msra.mxu0 %v589_v9  ;;  %v443_v51 = vld [vmem:[%s924_s4] ss:$0 sm:$0xff]  ;;  %s776_s4 = smov [#allocation10]  }
  0x57   :  { %594 = vmatprep.subr.bf16.mxu0 %v593_v16  ;;  %546 = vmatpush3.bf16.msra.mxu1 %v626_v18  ;;  %v452_v61 = vld [vmem:[%s926_s6] ss:$0 sm:$0xff]  ;;  %s428_s8 = sshll.u32 %s776_s4, 4  ;;  %s429_s8 = int_to_ptr.vmem [resolvable:$true] %s428_s8 }
  0x58   :  { %547 = vmatprep.subr.bf16.mxu1 %v774_v0  ;;  %s736_s9 = scalar_lea.vmem %s429_s8, 128  ;;  %p741_p5 = scmp.lt.s32.totalorder %s429_s8, %s429_s8 }
  0x59   :  { %p737_p4 = scmp.ne.s32.totalorder %s429_s8, %s736_s9  ;;  %p742_p6 = scmp.lt.s32.totalorder %s736_s9, %s736_s9 }
  0x5a   :  { %596 = vmatpush3.bf16.msra.mxu0 %v593_v16 }
  0x5b   :  { %598 = vmatprep.subr.bf16.mxu0 %v597_v21  ;;  %548 = vmatpush3.bf16.msra.mxu1 %v627_v22  ;;  %p743_p7 = por %p742_p6, %p741_p5 }
  0x5c   :  { %549 = vmatprep.subr.bf16.mxu1 %v774_v0 }
  0x5d   :  { %p744_p8 = pnand %p743_p7, %p737_p4 }
  0x5e   :  { %600 = vmatpush3.bf16.msra.mxu0 %v597_v21 }
  0x5f   :  { %602 = vmatprep.subr.bf16.mxu0 %v601_v23  ;;  %550 = vmatpush3.bf16.msra.mxu1 %v628_v31 }
  0x60   :  { %551 = vmatprep.subr.bf16.mxu1 %v774_v0 }
  0x62   :  { %604 = vmatpush3.bf16.msra.mxu0 %v601_v23 }
  0x63   :  { %606 = vmatprep.subr.bf16.mxu0 %v605_v26  ;;  %552 = vmatpush3.bf16.msra.mxu1 %v629_v32 }
  0x64   :  { %553 = vmatprep.subr.bf16.mxu1 %v774_v0 }
  0x66   :  { %608 = vmatpush3.bf16.msra.mxu0 %v605_v26 }
  0x67   :  { %610 = vmatprep.subr.bf16.mxu0 %v609_v29  ;;  %554 = vmatpush3.bf16.msra.mxu1 %v630_v33 }
  0x68   :  { %555 = vmatprep.subr.bf16.mxu1 %v774_v0 }
  0x6a   :  { %612 = vmatpush3.bf16.msra.mxu0 %v609_v29 }
  0x6b   :  { %561 = vmatprep.subr.bf16.mxu0 %v774_v0  ;;  %556 = vmatpush3.bf16.msra.mxu1 %v631_v34 }
  0x6d   :  { %539 = vmatmul.mubr.f32.vlgmr.msra.gmra.mrb[0].mxu0 %v84_v30 }
  0x6e   :  { %577 = vmatprep.mubr.msk.bf16.mxu0 %vm775_vm0, %v774_v0  ;;  %562 = vmatpush3.bf16.msra.mxu0 %v632_v35 }
  0x6f   :  { %563 = vmatprep.subr.bf16.mxu0 %v774_v0 }
  0x72   :  { %564 = vmatpush3.bf16.msra.mxu0 %v633_v36 }
  0x73   :  { %565 = vmatprep.subr.bf16.mxu0 %v774_v0 }
  0x76   :  { %566 = vmatpush3.bf16.msra.mxu0 %v634_v37 }
  0x77   :  { %567 = vmatprep.subr.bf16.mxu0 %v774_v0 }
  0x7a   :  { %568 = vmatpush3.bf16.msra.mxu0 %v635_v38 }
  0x7b   :  { %569 = vmatprep.subr.bf16.mxu0 %v774_v0 }
  0x7e   :  { %570 = vmatpush3.bf16.msra.mxu0 %v636_v47 }
  0x7f   :  { %571 = vmatprep.subr.bf16.mxu0 %v774_v0 }
  0x82   :  { %572 = vmatpush3.bf16.msra.mxu0 %v637_v48 }
  0x83   :  { %573 = vmatprep.subr.bf16.mxu0 %v774_v0 }
  0x86   :  { %574 = vmatpush3.bf16.msra.mxu0 %v638_v49 }
  0x87   :  { %575 = vmatprep.subr.bf16.mxu0 %v774_v0 }
  0x8a   :  { %576 = vmatpush3.bf16.msra.mxu0 %v639_v50 }
 0x140   :  { %v540_v40 = vpop.f32.mrb[0].mxu0 }
 0x141   :  { %v180_v41 = vadd.f32 %v540_v40, %v442_v39  ;;  %v174_v42 = vpop.f32.mrb[1].mxu0 }
 0x142   :  { %v175_v43 = vadd.f32 %v442_v39, %v174_v42 }
 0x143   :  { %640 = vtanh.f32 %v180_v41 }
 0x144   :  { %642 = vtanh.f32 %v175_v43 }
 0x14d   :  { %v641_v44 = vpop.eup %640 }
 0x14e   :  { %v643_v45 = vpop.eup %642 }
 0x14f   :  { %v185_v46 = vpack.c.bf16 %v641_v44, %v643_v45 }
 0x151   :  { %558 = vmatmul.mubr.bf16.vlgmr.msra.gmra.mrb[0].mxu1 %v185_v46 }
 0x224   :  { %v291_v52 = vpop.f32.mrb[0].mxu1 }
 0x225   :  { %v292_v53 = vadd.f32 %v443_v51, %v291_v52  ;;  %v559_v54 = vpop.f32.mrb[1].mxu1 }
 0x226   :  { %v294_v55 = vpop.f32.mrb[2].mxu1 }
 0x227   :  { %v295_v56 = vadd.f32 %v443_v51, %v294_v55  ;;  %v560_v57 = vpop.f32.mrb[3].mxu1  ;;  %644 = vtanh.f32 %v292_v53 }
 0x229   :  { %646 = vtanh.f32 %v295_v56 }
 0x231   :  { %v645_v58 = vpop.eup %644 }
 0x233   :  { %v647_v59 = vpop.eup %646 }
 0x234   :  { %v300_v60 = vpack.c.bf16 %v647_v59, %v645_v58 }
 0x236   :  { %578 = vmatmul.mubr.bf16.vlgmr.msra.gmra.mrb[4].mxu0 %v300_v60 }
 0x309   :  { %v406_v62 = vpop.f32.mrb[4].mxu0 }
 0x30a   :  { %v579_v63 = vpop.f32.mrb[5].mxu0  ;;  %v407_v1 = vadd.f32 %v452_v61, %v406_v62 }
 0x30b   :  { %v409_v0 = vpop.f32.mrb[6].mxu0 }
 0x30c   :  { %v410_v2 = vadd.f32 %v452_v61, %v409_v0  ;;  %v580_v3 = vpop.f32.mrb[7].mxu0 }
 0x30e   :  { %v468_v4 = vpack.c.bf16 %v410_v2, %v407_v1 }
 0x310   :  { %469 = vst [vmem:[#allocation10] sm:$0xff] %v468_v4  }
 0x311   :  { %747 = shalt.err (!%p744_p8)
}
 0x312   :  { %s748_s11 = scalar_lea.hbm %s927_s7, 128 }
 0x313   :  { %p749_p9 = scmp.ne.s32.totalorder %s927_s7, %s748_s11  ;;  %p752_p10 = scmp.lt.u32.totalorder %s748_s11, %s927_s7 }
 0x315   :  { %p754_p11 = pnand %p752_p10, %p749_p9 }
 0x317   :  { %757 = shalt.err (!%p754_p11)
}
 0x318   :  { %434 = dma.vmem_to_hbm [thread:$0]  %s429_s8, 128, %s927_s7, [#allocation4], %s771_s0, %s771_s0, %s772_s27  }
 0x319   :  { %764 = dma.done.wait [#allocation4], 128  }
 0x31a   :  { %765 = vsyncadd [#allocation4], 4294967168 }
 0x31b   :  { %438 = vsyncpa [#allocation3], 1 }
 0x31c   :  { %439 = vsyncpa [#allocation6], 1 }
 0x31d   :  { %440 = vsyncpa [#allocation9], 1 }
 0x31e   :  { %441 = vsyncpa [#allocation4], 1 }

</bundles_post_ra>
